<compile_context>
chip_gen: v7x
topology: tpu7x:2x2x1
jax: 0.10.0
libtpu: 0.0.40
codegen_flags: <defaults>
</compile_context>

<pallas_src>
import functools

import jax
import jax.numpy as jnp
from jax.experimental import pallas as pl
from jax.experimental.pallas import tpu as pltpu

HIDDEN_LAYER = 128


def _round_up(n, m):
    return ((n + m - 1) // m) * m


def _policy_mlp_kernel(x_ref, w1_ref, b1_ref, w2_ref, b2_ref, o_ref):
    # Layer 1: (TB, K) @ (K, H) on the MXU, f32 accumulation, then bias + ReLU.
    # K=4 is fine for the MXU; layer-1 FLOPs are negligible either way.
    h = jnp.dot(x_ref[...], w1_ref[...], preferred_element_type=jnp.float32)
    h = jnp.maximum(h + b1_ref[...], 0.0)          # (TB, H) + (1, H) broadcast
    # Layer 2: (TB, H) @ (H, 128) — lane-padded weights keep the matmul a full
    # lane-dense MXU tile while it is VMEM-resident.
    out = jnp.dot(h, w2_ref[...], preferred_element_type=jnp.float32)
    out = out + b2_ref[...]
    # TODO(synk): optionally fuse log-softmax / chosen-action log-prob here
    # while the (TB, 128) logits are still VMEM-resident (EUP slot is idle).
    # Store only the real action lanes; A equals the full output dim so the
    # narrow block is legal (masked vst) and no padded slab ever hits HBM.
    o_ref[...] = out[:, : o_ref.shape[1]].astype(o_ref.dtype)


def prepare_layer2(w2, b2):
    """Pad layer-2 weight/bias to 128 output lanes ONCE (outside the per-call
    path); weights are reused across rollout steps so this never recurs."""
    A = w2.shape[1]
    A_pad = max(128, _round_up(A, 128))
    if A_pad != A:
        w2 = jnp.pad(w2, ((0, 0), (0, A_pad - A)))
        b2 = jnp.pad(b2, ((0, 0), (0, A_pad - A)))
    return w2, b2


@functools.partial(jax.jit, static_argnames=("action_size", "tb"))
def policy_gradient_forward(x, w1, b1, w2p, b2p, *, action_size, tb=4096):
    """Fused forward pass of PolicyGradientNetwork.

    x:   (B, input_size) float32
    w1:  (input_size, HIDDEN_LAYER) float32   (transpose of nn.Linear.weight)
    b1:  (1, HIDDEN_LAYER) float32
    w2p: (HIDDEN_LAYER, 128) float32          (lane-padded, see prepare_layer2)
    b2p: (1, 128) float32                     (lane-padded)
    returns: (B, action_size) float32 logits
    """
    B, K = x.shape
    H = w1.shape[1]
    A = action_size
    A_pad = w2p.shape[1]

    # Batch tile: large enough that a whole rollout is 1-2 grid steps (per-step
    # overhead dominates the tiny DMA), capped at `tb` so double-buffered
    # x/out tiles stay a few MiB — comfortably inside v7x's 64 MiB VMEM.
    # Aiming for >=2 steps on large batches lets the "parallel" axis shard
    # across v7x's two TensorCores (harmless no-op on v5e/v6e).
    TB = min(tb, max(8, _round_up(pl.cdiv(B, 2), 8)))
    grid = (pl.cdiv(B, TB),)

    out = pl.pallas_call(
        _policy_mlp_kernel,
        out_shape=jax.ShapeDtypeStruct((B, A), jnp.float32),
        grid_spec=pltpu.PrefetchScalarGridSpec(
            num_scalar_prefetch=0,
            grid=grid,
            in_specs=[
                # x: one (TB, K) tile per step. K equals the full last dim so
                # no padding is needed; a ragged last batch tile is masked by
                # Pallas (rows are independent — no cross-row reduction here).
                pl.BlockSpec((TB, K), lambda i: (i, 0)),
                # Weights/biases: constant index_maps -> DMA'd once, resident
                # in VMEM across all batch tiles.
                pl.BlockSpec((K, H), lambda i: (0, 0)),
                pl.BlockSpec((1, H), lambda i: (0, 0)),
                pl.BlockSpec((H, A_pad), lambda i: (0, 0)),
                pl.BlockSpec((1, A_pad), lambda i: (0, 0)),
            ],
            # Narrow (TB, A) output block: A equals the full output dim (legal)
            # so writeback is only the real logits, not the 128-lane slab.
            out_specs=pl.BlockSpec((TB, A), lambda i: (i, 0)),
        ),
        compiler_params=pltpu.CompilerParams(
            # Independent batch tiles: shard across TCs on v7x.
            dimension_semantics=("parallel",),
            # Explicit budget: fits TB=4096 double-buffered tiles (~14 MiB) on
            # every generation, including v7x's smaller VMEM.
            vmem_limit_bytes=32 * 1024 * 1024,
        ),
    )(x, w1, b1, w2p, b2p)

    return out


def init_params(key, input_size, action_size):
    """Deterministic init mirroring nn.Linear's U(-1/sqrt(fan_in), 1/sqrt(fan_in))."""
    k1, k2, k3, k4 = jax.random.split(key, 4)
    bound1 = 1.0 / jnp.sqrt(input_size)
    bound2 = 1.0 / jnp.sqrt(HIDDEN_LAYER)
    w1 = jax.random.uniform(k1, (input_size, HIDDEN_LAYER),
                            minval=-bound1, maxval=bound1, dtype=jnp.float32)
    b1 = jax.random.uniform(k2, (1, HIDDEN_LAYER),
                            minval=-bound1, maxval=bound1, dtype=jnp.float32)
    w2 = jax.random.uniform(k3, (HIDDEN_LAYER, action_size),
                            minval=-bound2, maxval=bound2, dtype=jnp.float32)
    b2 = jax.random.uniform(k4, (1, action_size),
                            minval=-bound2, maxval=bound2, dtype=jnp.float32)
    return w1, b1, w2, b2


if __name__ == "__main__":
    # CartPole: observation dim 4, action dim 2.
    input_size, action_size = 4, 2
    key = jax.random.PRNGKey(0)
    kx, kp, kx2 = jax.random.split(key, 3)
    w1, b1, w2, b2 = init_params(kp, input_size, action_size)

    # Pad layer-2 to 128 lanes once, outside the per-call path.
    w2p, b2p = prepare_layer2(w2, b2)
    w2p, b2p = jax.block_until_ready((w2p, b2p))

    def ref_fwd(x):
        return jnp.maximum(x @ w1 + b1, 0.0) @ w2 + b2

    # Tolerance note: the reference XLA matmul and the in-kernel MXU matmul may
    # use different f32 strategies (bf16-pass vs full f32), giving ~1e-3 level
    # differences; structural bugs would show up as O(0.1) errors.
    ATOL = 1e-2

    # Case 1: tiny batch (single grid step, TB = 8).
    B = 8
    x = jax.random.normal(kx, (B, input_size), dtype=jnp.float32)
    logits = jax.block_until_ready(
        policy_gradient_forward(x, w1, b1, w2p, b2p, action_size=action_size))
    assert logits.shape == (B, action_size)
    assert jnp.allclose(logits, ref_fwd(x), atol=ATOL, rtol=ATOL)

    # Case 2: rollout-sized batch that is NOT a tile multiple — exercises the
    # 2-step "parallel" grid, VMEM-resident weights across steps, and the
    # ragged (masked) last batch tile with no wrapper-side padding.
    B2 = 999
    x2 = jax.random.normal(kx2, (B2, input_size), dtype=jnp.float32)
    logits2 = jax.block_until_ready(
        policy_gradient_forward(x2, w1, b1, w2p, b2p, action_size=action_size))
    assert logits2.shape == (B2, action_size)
    assert jnp.allclose(logits2, ref_fwd(x2), atol=ATOL, rtol=ATOL)

    print("KERNEL_OK")
</pallas_src>

<mosaic_0001>
module attributes {stable_mosaic.version = 11 : i64} {
  func.func @_policy_mlp_kernel(%arg0: i32, %arg1: memref<8x4xf32, #tpu.memory_space<vmem>>, %arg2: memref<4x128xf32, #tpu.memory_space<vmem>>, %arg3: memref<1x128xf32, #tpu.memory_space<vmem>>, %arg4: memref<128x128xf32, #tpu.memory_space<vmem>>, %arg5: memref<1x128xf32, #tpu.memory_space<vmem>>, %arg6: memref<8x2xf32, #tpu.memory_space<vmem>>) attributes {dimension_semantics = [#tpu.dimension_semantics<parallel>], iteration_bounds = array<i64: 1>, scalar_prefetch = 0 : i64, scratch_operands = 0 : i64, tpu.core_type = #tpu.core_type<tc>, window_params = [{transform_indices = @transform_0, window_bounds = array<i64: 8, 4>}, {pipeline_mode = #tpu.pipeline_mode<synchronous>, transform_indices = @transform_1, window_bounds = array<i64: 4, 128>}, {pipeline_mode = #tpu.pipeline_mode<synchronous>, transform_indices = @transform_2, window_bounds = array<i64: 1, 128>}, {pipeline_mode = #tpu.pipeline_mode<synchronous>, transform_indices = @transform_3, window_bounds = array<i64: 128, 128>}, {pipeline_mode = #tpu.pipeline_mode<synchronous>, transform_indices = @transform_4, window_bounds = array<i64: 1, 128>}, {transform_indices = @transform_5, window_bounds = array<i64: 8, 2>}]} {
    %c0 = arith.constant 0 : index
    %c0_0 = arith.constant 0 : index
    %0 = vector.load %arg1[%c0, %c0_0] : memref<8x4xf32, #tpu.memory_space<vmem>>, vector<8x4xf32>
    %c0_1 = arith.constant 0 : index
    %c0_2 = arith.constant 0 : index
    %1 = vector.load %arg2[%c0_1, %c0_2] : memref<4x128xf32, #tpu.memory_space<vmem>>, vector<4x128xf32>
    %cst = arith.constant dense<0.000000e+00> : vector<8x128xf32>
    %2 = tpu.matmul %0, %1, %cst {dimension_numbers = #tpu.dot_dimension_numbers<[1], [0], [0], [1], [0, 0, 1, 1], [], []>} : vector<8x4xf32>, vector<4x128xf32>, vector<8x128xf32> -> vector<8x128xf32>
    %c0_3 = arith.constant 0 : index
    %c0_4 = arith.constant 0 : index
    %3 = vector.load %arg3[%c0_3, %c0_4] : memref<1x128xf32, #tpu.memory_space<vmem>>, vector<1x128xf32>
    %4 = vector.broadcast %3 : vector<1x128xf32> to vector<8x128xf32>
    %5 = arith.addf %2, %4 : vector<8x128xf32>
    %cst_5 = arith.constant 0.000000e+00 : f32
    %6 = vector.broadcast %cst_5 : f32 to vector<8x128xf32>
    %7 = arith.maximumf %5, %6 : vector<8x128xf32>
    %c0_6 = arith.constant 0 : index
    %c0_7 = arith.constant 0 : index
    %8 = vector.load %arg4[%c0_6, %c0_7] : memref<128x128xf32, #tpu.memory_space<vmem>>, vector<128x128xf32>
    %cst_8 = arith.constant dense<0.000000e+00> : vector<8x128xf32>
    %9 = tpu.matmul %7, %8, %cst_8 {dimension_numbers = #tpu.dot_dimension_numbers<[1], [0], [0], [1], [0, 0, 1, 1], [], []>} : vector<8x128xf32>, vector<128x128xf32>, vector<8x128xf32> -> vector<8x128xf32>
    %c0_9 = arith.constant 0 : index
    %c0_10 = arith.constant 0 : index
    %10 = vector.load %arg5[%c0_9, %c0_10] : memref<1x128xf32, #tpu.memory_space<vmem>>, vector<1x128xf32>
    %11 = vector.broadcast %10 : vector<1x128xf32> to vector<8x128xf32>
    %12 = arith.addf %9, %11 : vector<8x128xf32>
    %13 = vector.extract_strided_slice %12 {offsets = [0, 0], sizes = [8, 2], strides = [1, 1]} : vector<8x128xf32> to vector<8x2xf32>
    %c0_11 = arith.constant 0 : index
    %c0_12 = arith.constant 0 : index
    %14 = vector.load %arg6[%c0_11, %c0_12] : memref<8x2xf32, #tpu.memory_space<vmem>>, vector<8x2xf32>
    tpu.vector_store %arg6[%c0_11, %c0_12], %13 {strides = array<i32>} : memref<8x2xf32, #tpu.memory_space<vmem>>, vector<8x2xf32>,
    return
  }
  func.func @transform_0(%arg0: i32) -> (i32, i32) {
    %c0_i32 = arith.constant 0 : i32
    %c0_i32_0 = arith.constant 0 : i32
    return %arg0, %c0_i32 : i32, i32
  }
  func.func @transform_1(%arg0: i32) -> (i32, i32) {
    %c0_i32 = arith.constant 0 : i32
    %c0_i32_0 = arith.constant 0 : i32
    %c0_i32_1 = arith.constant 0 : i32
    return %c0_i32, %c0_i32_0 : i32, i32
  }
  func.func @transform_2(%arg0: i32) -> (i32, i32) {
    %c0_i32 = arith.constant 0 : i32
    %c0_i32_0 = arith.constant 0 : i32
    %c0_i32_1 = arith.constant 0 : i32
    return %c0_i32, %c0_i32_0 : i32, i32
  }
  func.func @transform_3(%arg0: i32) -> (i32, i32) {
    %c0_i32 = arith.constant 0 : i32
    %c0_i32_0 = arith.constant 0 : i32
    %c0_i32_1 = arith.constant 0 : i32
    return %c0_i32, %c0_i32_0 : i32, i32
  }
  func.func @transform_4(%arg0: i32) -> (i32, i32) {
    %c0_i32 = arith.constant 0 : i32
    %c0_i32_0 = arith.constant 0 : i32
    %c0_i32_1 = arith.constant 0 : i32
    return %c0_i32, %c0_i32_0 : i32, i32
  }
  func.func @transform_5(%arg0: i32) -> (i32, i32) {
    %c0_i32 = arith.constant 0 : i32
    %c0_i32_0 = arith.constant 0 : i32
    return %arg0, %c0_i32 : i32, i32
  }
}

</mosaic_0001>

<bundles_post_ra>
// kernel: policy_gradient_forward.1
= control target key start
LH: loop header
LB: loop body
LE: loop exit
PB: predicated region body
PF: predicated region fallthrough
CT: control target
= control target key end

     0   :  { %10 = vsyncpa [#allocation3], 0  ;;  %s339_s18 = smov [#allocation2]   ;;  %s402_s0 = inlined_call_operand.vmem [shape: f32[8,4], index: 0, kind: input, shape index: {}]   ;;  %s403_s1 = inlined_call_operand.vmem [shape: f32[4,128], index: 1, kind: input, shape index: {}]   ;;  %s404_s2 = inlined_call_operand.vmem [shape: f32[1,128], index: 2, kind: input, shape index: {}]   ;;  %s405_s3 = inlined_call_operand.hbm [shape: f32[128,128], index: 3, kind: input, shape index: {}]   ;;  %s406_s4 = inlined_call_operand.vmem [shape: f32[1,128], index: 4, kind: input, shape index: {}]   ;;  %s407_s5 = inlined_call_operand.vmem [shape: f32[8,2], index: 5, kind: output, shape index: {}]  }
   0x1   :  { %s22_s19 = sshll.u32 %s339_s18, 4  ;;  %s315_s22 = scalar_lea.hbm %s405_s3, 2048  ;;  %s23_s19 = int_to_ptr.vmem [resolvable:$true] %s22_s19 }
   0x2   :  { %p316_p0 = scmp.ne.s32.totalorder %s405_s3, %s315_s22  ;;  %p319_p1 = scmp.lt.u32.totalorder %s315_s22, %s405_s3 }
   0x4   :  { %p321_p2 = pnand %p319_p1, %p316_p0 }
   0x6   :  { %324 = shalt.err (!%p321_p2)
}
   0x7   :  { %s325_s27 = scalar_lea.vmem %s23_s19, 2048  ;;  %p330_p4 = scmp.lt.s32.totalorder %s23_s19, %s23_s19 }
   0x8   :  { %p326_p3 = scmp.ne.s32.totalorder %s23_s19, %s325_s27  ;;  %p331_p5 = scmp.lt.s32.totalorder %s325_s27, %s325_s27 }
   0xa   :  { %p332_p6 = por %p331_p5, %p330_p4 }
   0xc   :  { %p333_p7 = pnand %p332_p6, %p326_p3 }
   0xe   :  { %336 = shalt.err (!%p333_p7)
}
   0xf   :  { %s340_s28 = smov 128   ;;  %s341_s29 = smov 8  }
  0x10   :  { %28 = dma.hbm_to_vmem [thread:$0]  %s405_s3, 2048, %s23_s19, [#allocation3], %s340_s28, %s340_s28, %s341_s29  }
  0x11   :  { %337 = dma.done.wait [#allocation3], 2048  }
  0x12   :  { %338 = vsyncadd [#allocation3], 4294965248  ;;  %v342_v0 = vmov 0.0   ;;  %vm343_vm0 = vmmov 0   ;;  %v344_v1 = vmov 0.0|0.0   ;;  %vm47_vm1 = vcmask 1043456  }
  0x13   :  { %245 = vmatprep.subr.mxu0 %v342_v0  ;;  %247 = vmatprep.mubr.msk.f32.mxu0 %vm343_vm0, %v342_v0  ;;  %vm43_vm2 = vcmask 31744   ;;  %v35_v2 = vld [vmem:[%s403_s1] sm:$0xf]  ;;  %v123_v5 = vld [vmem:[#allocation2 + $0x8] sm:$0xff]  ;;  %v124_v6 = vld [vmem:[#allocation2 + $0x10] sm:$0xff]  ;;  %vm215_vm3 = vcmask 15360  }
  0x14   :  { %285 = vmatprep.subr.bf16.mxu1 %v344_v1  ;;  %282 = vmatprep.mubr.msk.f32.mxu1 %vm343_vm0, %v342_v0  ;;  %v34_v3 = vld [vmem:[%s402_s0] sm:$0xff]  ;;  %v125_v7 = vld [vmem:[#allocation2 + $0x18] sm:$0xff]  ;;  %v127_v11 = vld [vmem:[#allocation2 + $0x28] sm:$0xff] }
  0x15   :  { %v122_v4 = vld [vmem:[#allocation2] sm:$0xff]  ;;  %246 = vmatpush3.msk.msra.mxu0 %vm47_vm1, %v35_v2  ;;  %v289_v9 = vpack.c.bf16 %v125_v7, %v124_v6  ;;  %v128_v13 = vld [vmem:[#allocation2 + $0x30] sm:$0xff]  ;;  %v129_v14 = vld [vmem:[#allocation2 + $0x38] sm:$0xff] }
  0x16   :  { %248 = vmatmul.mubr.msk.f32.vlgmr.msra.gmra.mrb[0].mxu0 %vm43_vm2, %v34_v3  ;;  %v286_v8 = vpack.c.bf16 %v123_v5, %v122_v4  ;;  %v126_v10 = vld [vmem:[#allocation2 + $0x20] sm:$0xff]  ;;  %v295_v15 = vpack.c.bf16 %v129_v14, %v128_v13  ;;  %v131_v17 = vld [vmem:[#allocation2 + $0x48] sm:$0xff]  ;;  %v132_v19 = vld [vmem:[#allocation2 + $0x50] sm:$0xff] }
  0x17   :  { %v292_v12 = vpack.c.bf16 %v127_v11, %v126_v10  ;;  %v130_v16 = vld [vmem:[#allocation2 + $0x40] sm:$0xff]  ;;  %v133_v20 = vld [vmem:[#allocation2 + $0x58] sm:$0xff]  ;;  %v135_v23 = vld [vmem:[#allocation2 + $0x68] sm:$0xff] }
  0x18   :  { %287 = vmatpush3.bf16.msra.mxu1 %v286_v8  ;;  %v298_v18 = vpack.c.bf16 %v131_v17, %v130_v16  ;;  %v301_v21 = vpack.c.bf16 %v133_v20, %v132_v19  ;;  %v134_v22 = vld [vmem:[#allocation2 + $0x60] sm:$0xff]  ;;  %v136_v25 = vld [vmem:[#allocation2 + $0x70] sm:$0xff]  ;;  %v137_v26 = vld [vmem:[#allocation2 + $0x78] sm:$0xff] }
  0x19   :  { %288 = vmatprep.subr.bf16.mxu1 %v344_v1  ;;  %v304_v24 = vpack.c.bf16 %v135_v23, %v134_v22  ;;  %v307_v27 = vpack.c.bf16 %v137_v26, %v136_v25  ;;  %v222_v28 = vld [vmem:[%s404_s2] ss:$0 sm:$0xff] }
  0x1a   :  { %v225_v33 = vld [vmem:[%s406_s4] ss:$0 sm:$0xff] }
  0x1c   :  { %290 = vmatpush3.bf16.msra.mxu1 %v289_v9 }
  0x1d   :  { %291 = vmatprep.subr.bf16.mxu1 %v344_v1 }
  0x20   :  { %293 = vmatpush3.bf16.msra.mxu1 %v292_v12 }
  0x21   :  { %294 = vmatprep.subr.bf16.mxu1 %v344_v1 }
  0x24   :  { %296 = vmatpush3.bf16.msra.mxu1 %v295_v15 }
  0x25   :  { %297 = vmatprep.subr.bf16.mxu1 %v344_v1 }
  0x28   :  { %299 = vmatpush3.bf16.msra.mxu1 %v298_v18 }
  0x29   :  { %300 = vmatprep.subr.bf16.mxu1 %v344_v1 }
  0x2c   :  { %302 = vmatpush3.bf16.msra.mxu1 %v301_v21 }
  0x2d   :  { %303 = vmatprep.subr.bf16.mxu1 %v344_v1 }
  0x30   :  { %305 = vmatpush3.bf16.msra.mxu1 %v304_v24 }
  0x31   :  { %306 = vmatprep.subr.bf16.mxu1 %v344_v1 }
  0x34   :  { %308 = vmatpush3.bf16.msra.mxu1 %v307_v27 }
  0xe9   :  { %v117_v29 = vpop.f32.mrb[0].mxu0 }
  0xea   :  { %v118_v30 = vadd.f32 %v222_v28, %v117_v29  ;;  %v249_v31 = vpop.f32.mrb[1].mxu0 }
  0xec   :  { %v121_v32 = vmax.f32 %v118_v30, 0.0 }
  0xee   :  { %283 = vmatmul.mubr.f32.vlgmr.msra.gmra.mrb[0].mxu1 %v121_v32 }
 0x1c1   :  { %v211_v34 = vpop.f32.mrb[0].mxu1 }
 0x1c2   :  { %v212_v35 = vadd.f32 %v225_v33, %v211_v34  ;;  %v284_v36 = vpop.f32.mrb[1].mxu1 }
 0x1c4   :  { %216 = vst.msk [vmem:[%s407_s5] sm:$0xff] %vm215_vm3, %v212_v35 }
 0x1c5   :  { %221 = vsyncpa [#allocation3], 1 }

</bundles_post_ra>
